<compile_context>
chip_gen: v7x
topology: tpu7x:2x2x1
jax: 0.10.0
libtpu: 0.0.40
codegen_flags: <defaults>
</compile_context>

<pallas_src>
import jax
import jax.numpy as jnp
from jax.experimental import pallas as pl
from jax.experimental.pallas import tpu as pltpu


# Conservative resident-table VMEM budget.  Chosen to fit v7x's 64 MiB/core
# VMEM (table is replicated per core under megacore sharding) with headroom
# for the double-buffered output tile; v5e/v6e have 128 MiB so it is safe
# everywhere.  Above this we fall back to the HBM row-gather kernel.
_VMEM_FOOTPRINT_BUDGET = 48 * 1024 * 1024


def _pad_to(n, multiple):
    return ((n + multiple - 1) // multiple) * multiple


def _embedding_onehot_kernel(idx_ref, w_ref, o_ref):
    """One grid step: gather `token_tile` rows via one-hot @ table on the MXU.

    idx_ref: VMEM (token_tile, 1) int32 token ids (single vector load).
    w_ref:   VMEM (V, D) full embedding table (resident across all steps).
    o_ref:   VMEM (token_tile, D) output tile.
    """
    ids = idx_ref[...]                                    # (TT, 1) int32
    token_tile = ids.shape[0]
    vocab = w_ref.shape[0]
    col = jax.lax.broadcasted_iota(jnp.int32, (token_tile, vocab), 1)
    onehot = (col == ids).astype(w_ref.dtype)             # pure VPU compare
    o_ref[...] = jnp.dot(
        onehot, w_ref[...], preferred_element_type=jnp.float32
    ).astype(o_ref.dtype)


def _embedding_gather_kernel(ids_ref, w_row_ref, o_ref):
    """Row-gather step: the pl.Element BlockSpec already DMA'd row ids[i]."""
    del ids_ref  # consumed only by the index_maps (scalar prefetch)
    o_ref[...] = w_row_ref[...]


def _lookup_onehot(idx, weight, *, token_tile, vmem_limit_bytes):
    """Table-resident MXU path. idx: (N,) int32, weight: (V, D_pad)."""
    (N,) = idx.shape
    V, D_pad = weight.shape
    N_pad = _pad_to(N, token_tile)
    if N_pad != N:
        idx = jnp.pad(idx, (0, N_pad - N))                # pad tokens -> id 0
    idx2d = idx.reshape(N_pad, 1)

    return pl.pallas_call(
        _embedding_onehot_kernel,
        out_shape=jax.ShapeDtypeStruct((N_pad, D_pad), weight.dtype),
        grid_spec=pltpu.PrefetchScalarGridSpec(
            num_scalar_prefetch=0,
            grid=(N_pad // token_tile,),
            in_specs=[
                # ids for this tile: one lane-aligned VMEM load per step.
                pl.BlockSpec((token_tile, 1), lambda i: (i, 0)),
                # Full weight table; constant index_map => stays resident,
                # no re-DMA across grid steps.
                # TODO(synk): pipeline_mode=pl.Buffered(1) would halve the
                #             table's VMEM footprint (most useful on v7x).
                pl.BlockSpec((V, D_pad), lambda i: (0, 0)),
            ],
            out_specs=pl.BlockSpec((token_tile, D_pad), lambda i: (i, 0)),
        ),
        compiler_params=pltpu.CompilerParams(
            dimension_semantics=("parallel",),   # megacore-shard token tiles
            vmem_limit_bytes=int(vmem_limit_bytes),
        ),
    )(idx2d, weight)


def _lookup_gather(idx, weight):
    """Large-vocab path: weight stays in HBM; a scalar-prefetch-driven
    pl.Element index_map DMAs exactly one embedding row per grid step.
    Scales to any V (no resident table)."""
    (N,) = idx.shape
    V, D_pad = weight.shape
    return pl.pallas_call(
        _embedding_gather_kernel,
        out_shape=jax.ShapeDtypeStruct((N, D_pad), weight.dtype),
        grid_spec=pltpu.PrefetchScalarGridSpec(
            num_scalar_prefetch=1,
            grid=(N,),
            in_specs=[
                pl.BlockSpec((pl.Element(1), D_pad), lambda i, ids: (ids[i], 0)),
            ],
            out_specs=pl.BlockSpec((1, D_pad), lambda i, ids: (i, 0)),
        ),
        compiler_params=pltpu.CompilerParams(
            dimension_semantics=("arbitrary",),
        ),
    )(idx, weight)


def embedding_lookup(x, weight, *, token_tile=128):
    """x: (B, S) integer ids, weight: (V, D) -> (B, S, D) = weight[x].

    token_tile: tokens per grid step on the table-resident path; 128 is
    MXU-native on v5e and fine on v6e/v7x (use 256 there if VMEM allows).
    """
    B, S = x.shape
    V, D = weight.shape
    N = B * S
    itemsize = jnp.dtype(weight.dtype).itemsize

    # Keep the output last dim lane-dense: pad D to a multiple of 128 in the
    # wrapper instead of emitting masked partial stores in the kernel.
    D_pad = _pad_to(D, 128)
    if D_pad != D:
        weight = jnp.pad(weight, ((0, 0), (0, D_pad - D)))

    # Clamp out-of-range ids (jnp.take clip semantics; torch would raise).
    idx = jnp.clip(x.reshape(N).astype(jnp.int32), 0, V - 1)

    # Resident-table VMEM footprint: (double-buffered) weight block +
    # double-buffered output tile + ids tiles.
    footprint = (2 * V * D_pad * itemsize
                 + 2 * token_tile * D_pad * itemsize
                 + 2 * token_tile * 4)

    if footprint <= _VMEM_FOOTPRINT_BUDGET:
        vmem_limit = max(footprint + (1 << 20), 32 * 1024 * 1024)
        out_flat = _lookup_onehot(idx, weight, token_tile=token_tile,
                                  vmem_limit_bytes=vmem_limit)
    else:
        out_flat = _lookup_gather(idx, weight)

    return out_flat[:N, :D].reshape(B, S, D)


if __name__ == "__main__":
    key = jax.random.PRNGKey(0)

    # Test 1: shapes consistent with a small nn.Embedding(V, D) forward.
    B, S = 2, 8
    V, D = 64, 128
    k_w, k_x, key = jax.random.split(key, 3)
    weight = jax.random.normal(k_w, (V, D), dtype=jnp.float32)
    x = jax.random.randint(k_x, (B, S), minval=0, maxval=V, dtype=jnp.int32)

    out = embedding_lookup(x, weight)
    out = jax.block_until_ready(out)
    ref = jnp.take(weight, x, axis=0)
    assert out.shape == (B, S, D)
    assert jnp.allclose(out, ref, atol=1e-5, rtol=1e-5), "mismatch vs reference (test 1)"

    # Test 2: exercises token padding (N not a multiple of token_tile) and
    # lane padding (D not a multiple of 128) across multiple grid steps.
    B2, S2 = 2, 200
    V2, D2 = 96, 96
    k_w2, k_x2, key = jax.random.split(key, 3)
    weight2 = jax.random.normal(k_w2, (V2, D2), dtype=jnp.float32)
    x2 = jax.random.randint(k_x2, (B2, S2), minval=0, maxval=V2, dtype=jnp.int32)

    out2 = embedding_lookup(x2, weight2)
    out2 = jax.block_until_ready(out2)
    ref2 = jnp.take(weight2, x2, axis=0)
    assert out2.shape == (B2, S2, D2)
    assert jnp.allclose(out2, ref2, atol=1e-5, rtol=1e-5), "mismatch vs reference (test 2)"

    print("KERNEL_OK")
</pallas_src>

<mosaic_0001>
module attributes {stable_mosaic.version = 11 : i64} {
  func.func @_embedding_onehot_kernel(%arg0: i32, %arg1: memref<128x1xi32, #tpu.memory_space<vmem>>, %arg2: memref<64x128xf32, #tpu.memory_space<vmem>>, %arg3: memref<128x128xf32, #tpu.memory_space<vmem>>) attributes {dimension_semantics = [#tpu.dimension_semantics<parallel>], iteration_bounds = array<i64: 1>, scalar_prefetch = 0 : i64, scratch_operands = 0 : i64, tpu.core_type = #tpu.core_type<tc>, window_params = [{transform_indices = @transform_0, window_bounds = array<i64: 128, 1>}, {pipeline_mode = #tpu.pipeline_mode<synchronous>, transform_indices = @transform_1, window_bounds = array<i64: 64, 128>}, {transform_indices = @transform_2, window_bounds = array<i64: 128, 128>}]} {
    %c0 = arith.constant 0 : index
    %c0_0 = arith.constant 0 : index
    %0 = vector.load %arg1[%c0, %c0_0] : memref<128x1xi32, #tpu.memory_space<vmem>>, vector<128x1xi32>
    %1 = tpu.iota {dimensions = array<i32: 1>} : vector<128x64xi32>
    %2 = vector.broadcast %0 : vector<128x1xi32> to vector<128x64xi32>
    %3 = arith.cmpi eq, %1, %2 : vector<128x64xi32>
    %4 = arith.extui %3 : vector<128x64xi1> to vector<128x64xi32>
    %5 = arith.sitofp %4 : vector<128x64xi32> to vector<128x64xf32>
    %c0_1 = arith.constant 0 : index
    %c0_2 = arith.constant 0 : index
    %6 = vector.load %arg2[%c0_1, %c0_2] : memref<64x128xf32, #tpu.memory_space<vmem>>, vector<64x128xf32>
    %cst = arith.constant dense<0.000000e+00> : vector<128x128xf32>
    %7 = tpu.matmul %5, %6, %cst {dimension_numbers = #tpu.dot_dimension_numbers<[1], [0], [0], [1], [0, 0, 1, 1], [], []>} : vector<128x64xf32>, vector<64x128xf32>, vector<128x128xf32> -> vector<128x128xf32>
    %c0_3 = arith.constant 0 : index
    %c0_4 = arith.constant 0 : index
    %8 = vector.load %arg3[%c0_3, %c0_4] : memref<128x128xf32, #tpu.memory_space<vmem>>, vector<128x128xf32>
    tpu.vector_store %arg3[%c0_3, %c0_4], %7 {strides = array<i32>} : memref<128x128xf32, #tpu.memory_space<vmem>>, vector<128x128xf32>,
    return
  }
  func.func @transform_0(%arg0: i32) -> (i32, i32) {
    %c0_i32 = arith.constant 0 : i32
    %c0_i32_0 = arith.constant 0 : i32
    return %arg0, %c0_i32 : i32, i32
  }
  func.func @transform_1(%arg0: i32) -> (i32, i32) {
    %c0_i32 = arith.constant 0 : i32
    %c0_i32_0 = arith.constant 0 : i32
    %c0_i32_1 = arith.constant 0 : i32
    return %c0_i32, %c0_i32_0 : i32, i32
  }
  func.func @transform_2(%arg0: i32) -> (i32, i32) {
    %c0_i32 = arith.constant 0 : i32
    %c0_i32_0 = arith.constant 0 : i32
    return %arg0, %c0_i32 : i32, i32
  }
}

</mosaic_0001>

<bundles_post_ra>
// kernel: tpu_custom_call.1
= control target key start
LH: loop header
LB: loop body
LE: loop exit
PB: predicated region body
PF: predicated region fallthrough
CT: control target
= control target key end

     0   :  { %v511_v2 = vmov 0   ;;  %s649_s0 = inlined_call_operand.vmem [shape: s32[128,1], index: 0, kind: input, shape index: {}]   ;;  %s650_s1 = inlined_call_operand.vmem [shape: f32[64,128], index: 1, kind: input, shape index: {}]   ;;  %s651_s2 = inlined_call_operand.hbm [shape: f32[128,128], index: 2, kind: output, shape index: {}]  }
   0x1   :  { %v13_v0 = vld [vmem:[%s649_s0 + $0x8] sm:$0xff]  ;;  %v12_v1 = vld [vmem:[%s649_s0] sm:$0xff]  ;;  %486 = vset.pattern.permute.xlu1 %v511_v2  ;;  %485 = vset.pattern.permute.xlu0 %v511_v2  ;;  %v128_v8 = vld [vmem:[%s650_s1 + $0x10] sm:$0xff] }
   0x2   :  { %34 = vperm.xlu1 %486, %v13_v0   ;;  %31 = vperm.xlu0 %485, %v12_v1   ;;  %v21_v3 = vld [vmem:[%s649_s0 + $0x48] sm:$0xff]  ;;  %v20_v4 = vld [vmem:[%s649_s0 + $0x40] sm:$0xff]  ;;  %v129_v9 = vld [vmem:[%s650_s1 + $0x18] sm:$0xff] }
   0x3   :  { %v126_v5 = vld [vmem:[%s650_s1] sm:$0xff]  ;;  %v127_v6 = vld [vmem:[%s650_s1 + $0x8] sm:$0xff]  ;;  %v22_v10 = vld [vmem:[%s649_s0 + $0x50] sm:$0xff]  ;;  %v460_v12 = vpack.c.bf16 %v129_v9, %v128_v8 }
   0x4   :  { %v456_v7 = vpack.c.bf16 %v127_v6, %v126_v5  ;;  %v14_v11 = vld [vmem:[%s649_s0 + $0x10] sm:$0xff]  ;;  %v130_v13 = vld [vmem:[%s650_s1 + $0x20] sm:$0xff]  ;;  %v131_v14 = vld [vmem:[%s650_s1 + $0x28] sm:$0xff] }
   0x6   :  { %58 = vperm.xlu1 %486, %v21_v3   ;;  %55 = vperm.xlu0 %485, %v20_v4  }
   0x7   :  { %457 = vmatprep.subr.bf16.mxu0 %v456_v7  ;;  %472 = vmatprep.subr.bf16.mxu1 %v456_v7 }
   0x8   :  { %7 = vsyncpa [#allocation3], 0  ;;  %459 = vmatpush3.bf16.msra.mxu0 %v456_v7  ;;  %476 = vmatpush3.bf16.msra.mxu1 %v456_v7  ;;  %v23_v15 = vld [vmem:[%s649_s0 + $0x58] sm:$0xff]  ;;  %v464_v17 = vpack.c.bf16 %v131_v14, %v130_v13  ;;  %v132_v18 = vld [vmem:[%s650_s1 + $0x30] sm:$0xff]  ;;  %v28_v29 = vlaneseq  ;;  %vm134_vm0 = vcmask 523264   ;;  %v512_v33 = vmov 0.0  }
   0x9   :  { %v15_v16 = vld [vmem:[%s649_s0 + $0x18] sm:$0xff]  ;;  %461 = vmatprep.subr.bf16.mxu0 %v460_v12  ;;  %473 = vmatprep.subr.bf16.mxu1 %v460_v12  ;;  %v24_v20 = vld [vmem:[%s649_s0 + $0x60] sm:$0xff]  ;;  %v25_v23 = vld [vmem:[%s649_s0 + $0x68] sm:$0xff] }
   0xa   :  { %61 = vperm.xlu1 %486, %v22_v10   ;;  %37 = vperm.xlu0 %485, %v14_v11   ;;  %v133_v19 = vld [vmem:[%s650_s1 + $0x38] sm:$0xff]  ;;  %v16_v21 = vld [vmem:[%s649_s0 + $0x20] sm:$0xff]  ;;  %v17_v24 = vld [vmem:[%s649_s0 + $0x28] sm:$0xff]  ;;  %v603_v30 = vand.u32 127, %v28_v29 }
   0xb   :  { %v468_v22 = vpack.c.bf16 %v133_v19, %v132_v18  ;;  %v26_v25 = vld [vmem:[%s649_s0 + $0x70] sm:$0xff]  ;;  %v27_v27 = vld [vmem:[%s649_s0 + $0x78] sm:$0xff] }
   0xc   :  { %463 = vmatpush3.bf16.msra.mxu0 %v460_v12  ;;  %477 = vmatpush3.bf16.msra.mxu1 %v460_v12  ;;  %v18_v26 = vld [vmem:[%s649_s0 + $0x30] sm:$0xff]  ;;  %v19_v28 = vld [vmem:[%s649_s0 + $0x38] sm:$0xff]  ;;  %s513_s0 = smov [#allocation2]  }
   0xd   :  { %465 = vmatprep.subr.bf16.mxu0 %v464_v17  ;;  %474 = vmatprep.subr.bf16.mxu1 %v464_v17  ;;  %s349_s28 = sshll.u32 %s513_s0, 4  ;;  %s350_s28 = int_to_ptr.vmem [resolvable:$true] %s349_s28 }
   0xe   :  { %64 = vperm.xlu1 %486, %v23_v15   ;;  %40 = vperm.xlu0 %485, %v15_v16   ;;  %s487_s29 = scalar_lea.vmem %s350_s28, 2048  ;;  %p492_p1 = scmp.lt.s32.totalorder %s350_s28, %s350_s28 }
   0xf   :  { %p488_p0 = scmp.ne.s32.totalorder %s350_s28, %s487_s29  ;;  %p493_p2 = scmp.lt.s32.totalorder %s487_s29, %s487_s29 }
  0x10   :  { %467 = vmatpush3.bf16.msra.mxu0 %v464_v17  ;;  %478 = vmatpush3.bf16.msra.mxu1 %v464_v17 }
  0x11   :  { %469 = vmatprep.subr.bf16.mxu0 %v468_v22  ;;  %475 = vmatprep.subr.bf16.mxu1 %v468_v22  ;;  %p494_p3 = por %p493_p2, %p492_p1 }
  0x12   :  { %67 = vperm.xlu1 %486, %v24_v20   ;;  %43 = vperm.xlu0 %485, %v16_v21  }
  0x13   :  { %p495_p4 = pnand %p494_p3, %p488_p0 }
  0x14   :  { %471 = vmatpush3.bf16.msra.mxu0 %v468_v22  ;;  %479 = vmatpush3.bf16.msra.mxu1 %v468_v22 }
  0x16   :  { %70 = vperm.xlu1 %486, %v25_v23   ;;  %46 = vperm.xlu0 %485, %v17_v24  }
  0x1a   :  { %73 = vperm.xlu1 %486, %v26_v25   ;;  %49 = vperm.xlu0 %485, %v18_v26  }
  0x1e   :  { %76 = vperm.xlu1 %486, %v27_v27   ;;  %52 = vperm.xlu0 %485, %v19_v28  }
  0x81   :  { %v35_v31 = vpop.permute.xlu1 %34  ;;  %v32_v32 = vpop.permute.xlu0 %31 }
  0x82   :  { %vm79_vm1 = vcmp.eq.s32.totalorder %v603_v30, %v35_v31  ;;  %vm78_vm2 = vcmp.eq.s32.totalorder %v603_v30, %v32_v32 }
  0x83   :  { %v361_v34 = vsel %vm79_vm1, 1.0, %v512_v33  ;;  %v360_v35 = vsel %vm78_vm2, 1.0, %v512_v33 }
  0x84   :  { %432 = vmatprep.mubr.msk.f32.mxu0 %vm134_vm0, %v360_v35 }
  0x85   :  { %v59_v36 = vpop.permute.xlu1 %58  ;;  %433 = vmatmul.mubr.msk.f32.vlgmr.msra.gmra.mrb[0].mxu0 %vm134_vm0, %v361_v34  ;;  %v56_v37 = vpop.permute.xlu0 %55 }
  0x86   :  { %vm87_vm3 = vcmp.eq.s32.totalorder %v603_v30, %v59_v36  ;;  %vm86_vm4 = vcmp.eq.s32.totalorder %v603_v30, %v56_v37 }
  0x87   :  { %v369_v38 = vsel %vm87_vm3, 1.0, %v512_v33  ;;  %v368_v39 = vsel %vm86_vm4, 1.0, %v512_v33 }
  0x88   :  { %444 = vmatprep.mubr.msk.f32.mxu1 %vm134_vm0, %v368_v39 }
  0x89   :  { %v62_v40 = vpop.permute.xlu1 %61  ;;  %445 = vmatmul.mubr.msk.f32.vlgmr.msra.gmra.mrb[0].mxu1 %vm134_vm0, %v369_v38  ;;  %v38_v41 = vpop.permute.xlu0 %37 }
  0x8a   :  { %vm88_vm5 = vcmp.eq.s32.totalorder %v603_v30, %v62_v40  ;;  %vm80_vm6 = vcmp.eq.s32.totalorder %v603_v30, %v38_v41 }
  0x8b   :  { %v370_v42 = vsel %vm88_vm5, 1.0, %v512_v33  ;;  %v362_v43 = vsel %vm80_vm6, 1.0, %v512_v33 }
  0x8c   :  { %435 = vmatprep.mubr.msk.f32.mxu0 %vm134_vm0, %v362_v43  ;;  %447 = vmatprep.mubr.msk.f32.mxu1 %vm134_vm0, %v370_v42 }
  0x8d   :  { %v65_v44 = vpop.permute.xlu1 %64  ;;  %v41_v45 = vpop.permute.xlu0 %40 }
  0x8e   :  { %vm89_vm7 = vcmp.eq.s32.totalorder %v603_v30, %v65_v44  ;;  %vm81_vm8 = vcmp.eq.s32.totalorder %v603_v30, %v41_v45 }
  0x8f   :  { %v371_v46 = vsel %vm89_vm7, 1.0, %v512_v33  ;;  %v363_v47 = vsel %vm81_vm8, 1.0, %v512_v33 }
  0x90   :  { %436 = vmatmul.mubr.msk.f32.gmra.mrb[2].mxu0 %vm134_vm0, %v363_v47  ;;  %448 = vmatmul.mubr.msk.f32.gmra.mrb[2].mxu1 %vm134_vm0, %v371_v46 }
  0x91   :  { %v68_v48 = vpop.permute.xlu1 %67  ;;  %v44_v49 = vpop.permute.xlu0 %43 }
  0x92   :  { %vm90_vm9 = vcmp.eq.s32.totalorder %v603_v30, %v68_v48  ;;  %vm82_vm10 = vcmp.eq.s32.totalorder %v603_v30, %v44_v49 }
  0x93   :  { %v372_v50 = vsel %vm90_vm9, 1.0, %v512_v33  ;;  %v364_v51 = vsel %vm82_vm10, 1.0, %v512_v33 }
  0x94   :  { %438 = vmatprep.mubr.msk.f32.mxu0 %vm134_vm0, %v364_v51  ;;  %450 = vmatprep.mubr.msk.f32.mxu1 %vm134_vm0, %v372_v50 }
  0x95   :  { %v71_v52 = vpop.permute.xlu1 %70  ;;  %v47_v53 = vpop.permute.xlu0 %46 }
  0x96   :  { %vm91_vm11 = vcmp.eq.s32.totalorder %v603_v30, %v71_v52  ;;  %vm83_vm12 = vcmp.eq.s32.totalorder %v603_v30, %v47_v53 }
  0x97   :  { %v373_v54 = vsel %vm91_vm11, 1.0, %v512_v33  ;;  %v365_v55 = vsel %vm83_vm12, 1.0, %v512_v33 }
  0x98   :  { %439 = vmatmul.mubr.msk.f32.gmra.mrb[4].mxu0 %vm134_vm0, %v365_v55  ;;  %451 = vmatmul.mubr.msk.f32.gmra.mrb[4].mxu1 %vm134_vm0, %v373_v54 }
  0x99   :  { %v74_v56 = vpop.permute.xlu1 %73  ;;  %v50_v57 = vpop.permute.xlu0 %49 }
  0x9a   :  { %vm92_vm13 = vcmp.eq.s32.totalorder %v603_v30, %v74_v56  ;;  %vm84_vm14 = vcmp.eq.s32.totalorder %v603_v30, %v50_v57 }
  0x9b   :  { %v374_v58 = vsel %vm92_vm13, 1.0, %v512_v33  ;;  %v366_v59 = vsel %vm84_vm14, 1.0, %v512_v33 }
  0x9c   :  { %441 = vmatprep.mubr.msk.f32.mxu0 %vm134_vm0, %v366_v59  ;;  %453 = vmatprep.mubr.msk.f32.mxu1 %vm134_vm0, %v374_v58 }
  0x9d   :  { %v77_v60 = vpop.permute.xlu1 %76  ;;  %v53_v61 = vpop.permute.xlu0 %52 }
  0x9e   :  { %vm93_vm15 = vcmp.eq.s32.totalorder %v603_v30, %v77_v60  ;;  %vm85_vm1 = vcmp.eq.s32.totalorder %v603_v30, %v53_v61 }
  0x9f   :  { %v375_v62 = vsel %vm93_vm15, 1.0, %v512_v33  ;;  %v367_v63 = vsel %vm85_vm1, 1.0, %v512_v33 }
  0xa0   :  { %442 = vmatmul.mubr.msk.f32.gmra.mrb[6].mxu0 %vm134_vm0, %v367_v63  ;;  %454 = vmatmul.mubr.msk.f32.gmra.mrb[6].mxu1 %vm134_vm0, %v375_v62 }
 0x158   :  { %v434_v0 = vpop.f32.mrb[0].mxu0 }
 0x159   :  { %329 = vst [vmem:[#allocation2 + $0x8] sm:$0xff] %v434_v0  ;;  %v249_v1 = vpop.f32.mrb[1].mxu0 }
 0x15a   :  { %328 = vst [vmem:[#allocation2] sm:$0xff] %v249_v1 }
 0x15c   :  { %v446_v2 = vpop.f32.mrb[0].mxu1 }
 0x15d   :  { %337 = vst [vmem:[#allocation2 + $0x48] sm:$0xff] %v446_v2  ;;  %v289_v3 = vpop.f32.mrb[1].mxu1 }
 0x15e   :  { %336 = vst [vmem:[#allocation2 + $0x40] sm:$0xff] %v289_v3 }
 0x163   :  { %v437_v4 = vpop.f32.mrb[2].mxu0  ;;  %v449_v5 = vpop.f32.mrb[2].mxu1 }
 0x164   :  { %331 = vst [vmem:[#allocation2 + $0x18] sm:$0xff] %v437_v4  ;;  %339 = vst [vmem:[#allocation2 + $0x58] sm:$0xff] %v449_v5  ;;  %v259_v6 = vpop.f32.mrb[3].mxu0  ;;  %v299_v7 = vpop.f32.mrb[3].mxu1 }
 0x165   :  { %330 = vst [vmem:[#allocation2 + $0x10] sm:$0xff] %v259_v6  ;;  %338 = vst [vmem:[#allocation2 + $0x50] sm:$0xff] %v299_v7 }
 0x16b   :  { %v440_v8 = vpop.f32.mrb[4].mxu0  ;;  %v452_v9 = vpop.f32.mrb[4].mxu1 }
 0x16c   :  { %333 = vst [vmem:[#allocation2 + $0x28] sm:$0xff] %v440_v8  ;;  %341 = vst [vmem:[#allocation2 + $0x68] sm:$0xff] %v452_v9  ;;  %v269_v10 = vpop.f32.mrb[5].mxu0  ;;  %v309_v11 = vpop.f32.mrb[5].mxu1 }
 0x16d   :  { %332 = vst [vmem:[#allocation2 + $0x20] sm:$0xff] %v269_v10  ;;  %340 = vst [vmem:[#allocation2 + $0x60] sm:$0xff] %v309_v11 }
 0x173   :  { %v443_v12 = vpop.f32.mrb[6].mxu0  ;;  %v455_v13 = vpop.f32.mrb[6].mxu1 }
 0x174   :  { %335 = vst [vmem:[#allocation2 + $0x38] sm:$0xff] %v443_v12  ;;  %343 = vst [vmem:[#allocation2 + $0x78] sm:$0xff] %v455_v13  ;;  %v279_v14 = vpop.f32.mrb[7].mxu0  ;;  %v319_v15 = vpop.f32.mrb[7].mxu1 }
 0x175   :  { %334 = vst [vmem:[#allocation2 + $0x30] sm:$0xff] %v279_v14  ;;  %342 = vst [vmem:[#allocation2 + $0x70] sm:$0xff] %v319_v15 }
 0x176   :  { %498 = shalt.err (!%p495_p4)
}
 0x177   :  { %s499_s4 = scalar_lea.hbm %s651_s2, 2048 }
 0x178   :  { %p500_p5 = scmp.ne.s32.totalorder %s651_s2, %s499_s4  ;;  %p503_p6 = scmp.lt.u32.totalorder %s499_s4, %s651_s2 }
 0x17a   :  { %p505_p7 = pnand %p503_p6, %p500_p5 }
 0x17c   :  { %508 = shalt.err (!%p505_p7)
}
 0x17d   :  { %s514_s9 = smov 128   ;;  %s515_s10 = smov 8  }
 0x17e   :  { %355 = dma.vmem_to_hbm [thread:$0]  %s350_s28, 2048, %s651_s2, [#allocation3], %s514_s9, %s514_s9, %s515_s10  }
 0x17f   :  { %509 = dma.done.wait [#allocation3], 2048  }
 0x180   :  { %510 = vsyncadd [#allocation3], 4294965248 }
 0x181   :  { %359 = vsyncpa [#allocation3], 1 }

</bundles_post_ra>
